<compile_context>
chip_gen: v5e
topology: v5e:2x2
jax: 0.10.0
libtpu: 0.0.40
codegen_flags: <defaults>
</compile_context>

<pallas_src>
import functools
import math

import jax
import jax.numpy as jnp
from jax.experimental import pallas as pl
from jax.experimental.pallas import tpu as pltpu

_EPS = 1e-8  # torch.nn.functional.cosine_similarity default eps


def _cos_sim_partial_kernel(pred_ref, true_ref, out_ref, *, tile_r, n_rows):
    pid = pl.program_id(0)

    p = pred_ref[...].astype(jnp.float32)                      # [TILE_R, D]
    t = true_ref[...].astype(jnp.float32)                      # [TILE_R, D]

    dot = jnp.sum(p * t, axis=-1, keepdims=True)               # [TILE_R, 1]
    ssq_p = jnp.sum(p * p, axis=-1, keepdims=True)             # [TILE_R, 1]
    ssq_t = jnp.sum(t * t, axis=-1, keepdims=True)             # [TILE_R, 1]

    # ATen: cos = dot / sqrt(clamp(ssq_p * ssq_t, eps^2))
    denom_sq = jnp.maximum(ssq_p * ssq_t, _EPS * _EPS)
    cos = dot * jax.lax.rsqrt(denom_sq)                        # [TILE_R, 1]

    def _write(partial):
        # Broadcast the tile's partial sum into its own aligned output block;
        # the wrapper reads element [i, 0, 0] of each tile.
        out_ref[...] = jnp.full(out_ref.shape, partial, dtype=out_ref.dtype)

    if n_rows % tile_r == 0:
        _write(jnp.sum(cos))
    else:
        last = pl.num_programs(0) - 1

        @pl.when(pid != last)
        def _():
            _write(jnp.sum(cos))

        @pl.when(pid == last)
        def _():
            # Mask padded rows of the ragged last tile (where-select, NaN-safe).
            row = pid * tile_r + jax.lax.broadcasted_iota(
                jnp.int32, (tile_r, 1), 0)
            _write(jnp.sum(jnp.where(row < n_rows, cos, 0.0)))


def _vmem_budgets():
    """(tile byte budget, vmem_limit_bytes) chosen per TPU generation."""
    try:
        vmem_cap = pltpu.get_tpu_info().vmem_capacity_bytes
    except Exception:
        vmem_cap = 64 * 1024 * 1024  # conservative (v7x-sized) fallback
    if vmem_cap >= 100 * 1024 * 1024:        # v5e / v6e: 128 MiB VMEM
        return 56 * 1024 * 1024, 96 * 1024 * 1024
    else:                                    # v7x: 64 MiB VMEM per core
        return 20 * 1024 * 1024, 36 * 1024 * 1024


def _choose_tile_rows(n_rows, d, itemsize, budget_bytes):
    """Largest row tile whose pipelined inputs + f32 temporaries fit budget."""
    mult = 32 // itemsize if itemsize < 4 else 8   # sublane packing for dtype
    # 2 inputs x 2 pipeline buffers at native dtype, plus ~3 full-width f32
    # temporaries (upcasts / products) materialized inside the kernel.
    per_row_bytes = d * (4 * itemsize + 3 * 4)
    tile = budget_bytes // max(1, per_row_bytes)
    tile = max(mult, (tile // mult) * mult)
    tile = min(tile, 8192)                         # budget-limited, high cap
    # No point tiling past the (sublane-rounded) problem size.
    tile = min(tile, ((n_rows + mult - 1) // mult) * mult)
    return max(tile, mult)


def cosine_similarity_loss(y_pred, y_true):
    """Computes 1 - mean(cosine_similarity(y_pred, y_true, dim=-1))."""
    assert y_pred.shape == y_true.shape, "inputs must have identical shapes"
    d = y_pred.shape[-1]
    r = int(math.prod(y_pred.shape[:-1])) if y_pred.ndim > 1 else 1

    pred2d = y_pred.reshape(r, d)
    true2d = y_true.reshape(r, d)

    itemsize = jnp.dtype(y_pred.dtype).itemsize
    budget, vmem_limit = _vmem_budgets()
    tile_r = _choose_tile_rows(r, d, itemsize, budget)
    num_tiles = pl.cdiv(r, tile_r)

    kernel = functools.partial(_cos_sim_partial_kernel, tile_r=tile_r, n_rows=r)

    cost = pl.CostEstimate(
        flops=6 * r * d,                 # 3 muls + 3 adds per element (approx)
        transcendentals=r,               # one rsqrt per row
        bytes_accessed=2 * r * d * itemsize + num_tiles * 8 * 128 * 4,
    )

    partials = pl.pallas_call(
        kernel,
        out_shape=jax.ShapeDtypeStruct((num_tiles, 8, 128), jnp.float32),
        grid_spec=pltpu.PrefetchScalarGridSpec(
            num_scalar_prefetch=0,
            grid=(num_tiles,),
            in_specs=[
                pl.BlockSpec((tile_r, d), lambda i: (i, 0)),
                pl.BlockSpec((tile_r, d), lambda i: (i, 0)),
            ],
            out_specs=pl.BlockSpec((1, 8, 128), lambda i: (i, 0, 0)),
        ),
        compiler_params=pltpu.CompilerParams(
            dimension_semantics=("parallel",),   # independent per-tile partials
            vmem_limit_bytes=vmem_limit,
        ),
        cost_estimate=cost,
    )(pred2d, true2d)

    total = jnp.sum(partials[:, 0, 0])           # tree-reduce the tile partials
    loss = 1.0 - total / r
    # PyTorch returns the input dtype; match it (cosmetic for f32).
    return loss.astype(y_pred.dtype)


if __name__ == "__main__":
    # Small deterministic example: batch=2, seq=8, hidden=32
    key = jax.random.PRNGKey(0)
    k1, k2 = jax.random.split(key)
    y_pred = jax.random.normal(k1, (2, 8, 32), dtype=jnp.float32)
    y_true = jax.random.normal(k2, (2, 8, 32), dtype=jnp.float32)

    loss = cosine_similarity_loss(y_pred, y_true)
    jax.block_until_ready(loss)

    # Reference check in plain JAX (same math as torch.nn.functional)
    dot = jnp.sum(y_pred * y_true, axis=-1)
    denom = jnp.sqrt(jnp.maximum(
        jnp.sum(y_pred * y_pred, axis=-1) * jnp.sum(y_true * y_true, axis=-1),
        _EPS * _EPS))
    ref = 1.0 - jnp.mean(dot / denom)
    assert jnp.allclose(loss, ref, atol=1e-5, rtol=1e-5), (loss, ref)

    print("KERNEL_OK")
</pallas_src>

<mosaic_0001>
module attributes {stable_mosaic.version = 11 : i64} {
  func.func @_cos_sim_partial_kernel(%arg0: i32, %arg1: memref<16x32xf32, #tpu.memory_space<vmem>>, %arg2: memref<16x32xf32, #tpu.memory_space<vmem>>, %arg3: memref<1x8x128xf32, #tpu.memory_space<vmem>>) attributes {dimension_semantics = [#tpu.dimension_semantics<parallel>], iteration_bounds = array<i64: 1>, scalar_prefetch = 0 : i64, scratch_operands = 0 : i64, tpu.core_type = #tpu.core_type<tc>, window_params = [{transform_indices = @transform_0, window_bounds = array<i64: 16, 32>}, {transform_indices = @transform_1, window_bounds = array<i64: 16, 32>}, {transform_indices = @transform_2, window_bounds = array<i64: 1, 8, 128>}]} {
    %c0 = arith.constant 0 : index
    %c0_0 = arith.constant 0 : index
    %0 = vector.load %arg1[%c0, %c0_0] : memref<16x32xf32, #tpu.memory_space<vmem>>, vector<16x32xf32>
    %c0_1 = arith.constant 0 : index
    %c0_2 = arith.constant 0 : index
    %1 = vector.load %arg2[%c0_1, %c0_2] : memref<16x32xf32, #tpu.memory_space<vmem>>, vector<16x32xf32>
    %2 = arith.mulf %0, %1 : vector<16x32xf32>
    %cst = arith.constant dense<0.000000e+00> : vector<16xf32>
    %3 = vector.multi_reduction <add>, %2, %cst [1] : vector<16x32xf32> to vector<16xf32>
    %4 = vector.shape_cast %3 : vector<16xf32> to vector<16x1xf32>
    %5 = arith.mulf %0, %0 : vector<16x32xf32>
    %cst_3 = arith.constant dense<0.000000e+00> : vector<16xf32>
    %6 = vector.multi_reduction <add>, %5, %cst_3 [1] : vector<16x32xf32> to vector<16xf32>
    %7 = vector.shape_cast %6 : vector<16xf32> to vector<16x1xf32>
    %8 = arith.mulf %1, %1 : vector<16x32xf32>
    %cst_4 = arith.constant dense<0.000000e+00> : vector<16xf32>
    %9 = vector.multi_reduction <add>, %8, %cst_4 [1] : vector<16x32xf32> to vector<16xf32>
    %10 = vector.shape_cast %9 : vector<16xf32> to vector<16x1xf32>
    %11 = arith.mulf %7, %10 : vector<16x1xf32>
    %cst_5 = arith.constant 1.000000e-16 : f32
    %12 = vector.broadcast %cst_5 : f32 to vector<16x1xf32>
    %13 = arith.maximumf %11, %12 : vector<16x1xf32>
    %14 = math.rsqrt %13 : vector<16x1xf32>
    %15 = arith.mulf %4, %14 : vector<16x1xf32>
    %16 = vector.shape_cast %15 : vector<16x1xf32> to vector<1x16x1xf32>
    %cst_6 = arith.constant dense<0.000000e+00> : vector<1xf32>
    %17 = vector.multi_reduction <add>, %16, %cst_6 [1, 2] : vector<1x16x1xf32> to vector<1xf32>
    %18 = vector.shape_cast %17 : vector<1xf32> to vector<1x1x1xf32>
    %19 = vector.extract %18[0, 0, 0] : f32 from vector<1x1x1xf32>
    %20 = vector.broadcast %19 : f32 to vector<1x8x128xf32>
    %c0_7 = arith.constant 0 : index
    %c0_8 = arith.constant 0 : index
    %c0_9 = arith.constant 0 : index
    %21 = vector.load %arg3[%c0_7, %c0_8, %c0_9] : memref<1x8x128xf32, #tpu.memory_space<vmem>>, vector<1x8x128xf32>
    tpu.vector_store %arg3[%c0_7, %c0_8, %c0_9], %20 {strides = array<i32>} : memref<1x8x128xf32, #tpu.memory_space<vmem>>, vector<1x8x128xf32>,
    return
  }
  func.func @transform_0(%arg0: i32) -> (i32, i32) {
    %c0_i32 = arith.constant 0 : i32
    %c0_i32_0 = arith.constant 0 : i32
    return %arg0, %c0_i32 : i32, i32
  }
  func.func @transform_1(%arg0: i32) -> (i32, i32) {
    %c0_i32 = arith.constant 0 : i32
    %c0_i32_0 = arith.constant 0 : i32
    return %arg0, %c0_i32 : i32, i32
  }
  func.func @transform_2(%arg0: i32) -> (i32, i32, i32) {
    %c0_i32 = arith.constant 0 : i32
    %c0_i32_0 = arith.constant 0 : i32
    %c0_i32_1 = arith.constant 0 : i32
    return %arg0, %c0_i32, %c0_i32_0 : i32, i32, i32
  }
}

</mosaic_0001>

<bundles_post_ra>
// kernel: tpu_custom_call.1
= control target key start
LH: loop header
LB: loop body
LE: loop exit
PB: predicated region body
PF: predicated region fallthrough
CT: control target
= control target key end

     0   :  { %7 = vsyncpa [#allocation3], 0  ;;  %s256_s0 = inlined_call_operand.hbm [shape: f32[16,32], index: 0, kind: input, shape index: {}]   ;;  %s257_s1 = inlined_call_operand.hbm [shape: f32[16,32], index: 1, kind: input, shape index: {}]   ;;  %s258_s2 = inlined_call_operand.hbm [shape: f32[1,8,128], index: 2, kind: output, shape index: {}]  }
   0x1   :  { %8 = vsyncpa [#allocation6], 0 }
   0x2   :  { %9 = vsyncpa [#allocation4], 0  ;;  %s14_s11 = sshll.u32 %s256_s0, 4  ;;  %s221_s12 = smov [#allocation2]   ;;  %s15_s11 = int_to_ptr.hbm [resolvable:$true] %s14_s11 }
   0x3   :  { %s16_s13 = sshll.u32 %s221_s12, 4  ;;  %s27_s16 = sshll.u32 %s257_s1, 4  ;;  %s17_s13 = int_to_ptr.vmem [resolvable:$true] %s16_s13  ;;  %s28_s16 = int_to_ptr.hbm [resolvable:$true] %s27_s16 }
   0x4   :  { %s222_s17 = smov 128   ;;  %s223_s18 = smov 8  }
   0x5   :  { %22 = dma.hbm_to_vmem [thread:$0]  %s15_s11, 256, %s17_s13, [#allocation3], %s222_s17, %s222_s17, %s223_s18  }
   0x6   :  { %s224_s19 = smov [#allocation5]  }
   0x7   :  { %s29_s20 = sshll.u32 %s224_s19, 4  ;;  %s30_s20 = int_to_ptr.vmem [resolvable:$true] %s29_s20 }
   0x8   :  { %35 = dma.hbm_to_vmem [thread:$0]  %s28_s16, 256, %s30_s20, [#allocation6], %s222_s17, %s222_s17, %s223_s18  }
   0x9   :  { %215 = dma.done.wait [#allocation3], 256  }
   0xa   :  { %216 = vsyncadd [#allocation3], 4294967040 }
   0xb   :  { %217 = dma.done.wait [#allocation6], 256  }
   0xc   :  { %218 = vsyncadd [#allocation6], 4294967040  ;;  %v46_v0 = vld [vmem:[#allocation5] sm:$0xff]  ;;  %vm50_vm0 = vcmask 261120   ;;  %v44_v1 = vld [vmem:[#allocation2] sm:$0xff]  ;;  %vm99_vm7 = vcmask 7168  }
   0xd   :  { %v65_v2 = vmul.f32 %v46_v0, %v46_v0  ;;  %v57_v3 = vmul.f32 %v44_v1, %v44_v1  ;;  %v48_v4 = vmul.f32 %v46_v0, %v44_v1  ;;  %v47_v5 = vld [vmem:[#allocation5 + $0x8] sm:$0xff]  ;;  %v45_v6 = vld [vmem:[#allocation2 + $0x8] sm:$0xff]  ;;  %s225_s0 = smov [#allocation7]   ;;  %s121_s23 = sshll.u32 %s258_s2, 4  ;;  %s122_s23 = int_to_ptr.hbm [resolvable:$true] %s121_s23 }
   0xe   :  { %v66_v10 = vmul.f32 %v47_v5, %v47_v5  ;;  %v58_v11 = vmul.f32 %v45_v6, %v45_v6  ;;  %v49_v12 = vmul.f32 %v47_v5, %v45_v6  ;;  %s119_s1 = sshll.u32 %s225_s0, 4  ;;  %s120_s1 = int_to_ptr.vmem [resolvable:$true] %s119_s1 }
   0xf   :  { %v67_v7 = vsel %vm50_vm0, %v65_v2, 0.0  ;;  %v59_v8 = vsel %vm50_vm0, %v57_v3, 0.0  ;;  %v51_v9 = vsel %vm50_vm0, %v48_v4, 0.0 }
  0x10   :  { %68 = vadd.xlane.f32.xlu1 %v67_v7  ;;  %60 = vadd.xlane.f32.xlu0 %v59_v8  ;;  %v70_v13 = vsel %vm50_vm0, %v66_v10, 0.0  ;;  %v62_v14 = vsel %vm50_vm0, %v58_v11, 0.0  ;;  %v54_v15 = vsel %vm50_vm0, %v49_v12, 0.0 }
  0x11   :  { %52 = vadd.xlane.f32.xlu2 %v51_v9 }
  0x18   :  { %71 = vadd.xlane.f32.xlu1 %v70_v13  ;;  %63 = vadd.xlane.f32.xlu0 %v62_v14 }
  0x19   :  { %55 = vadd.xlane.f32.xlu2 %v54_v15 }
  0x83   :  { %v69_v16 = vpop.xlane.xlu1 %68  ;;  %v61_v17 = vpop.xlane.xlu0 %60 }
  0x84   :  { %v73_v18 = vmul.f32 %v69_v16, %v61_v17  ;;  %v53_v29 = vpop.xlane.xlu2 %52 }
  0x86   :  { %v75_v19 = vmax.f32 %v73_v18, 1e-16 }
  0x88   :  { %139 = vrsqrt.f32 %v75_v19  ;;  %vm83_vm2 = vweird.f32 %v75_v19 }
  0x8b   :  { %v72_v20 = vpop.xlane.xlu1 %71  ;;  %v64_v21 = vpop.xlane.xlu0 %63 }
  0x8c   :  { %v74_v22 = vmul.f32 %v72_v20, %v64_v21  ;;  %v56_v38 = vpop.xlane.xlu2 %55 }
  0x8e   :  { %v140_v23 = vpop.eup %139  ;;  %v76_v24 = vmax.f32 %v74_v22, 1e-16 }
  0x8f   :  { %v78_v25 = vmul.f32 %v140_v23, %v75_v19  ;;  %vm84_vm1 = vweird.f32 %v140_v23 }
  0x90   :  { %141 = vrsqrt.f32 %v76_v24  ;;  %vm85_vm3 = vmor %vm83_vm2, %vm84_vm1  ;;  %vm93_vm5 = vweird.f32 %v76_v24 }
  0x91   :  { %v79_v26 = vmul.f32 %v140_v23, %v78_v25 }
  0x93   :  { %v80_v27 = vmul.f32 0.5, %v79_v26 }
  0x95   :  { %v81_v28 = vsub.f32 1.5, %v80_v27 }
  0x96   :  { %v142_v30 = vpop.eup %141 }
  0x97   :  { %v88_v31 = vmul.f32 %v142_v30, %v76_v24  ;;  %v82_v33 = vmul.f32 %v140_v23, %v81_v28  ;;  %vm94_vm4 = vweird.f32 %v142_v30 }
  0x98   :  { %vm95_vm6 = vmor %vm93_vm5, %vm94_vm4 }
  0x99   :  { %v89_v32 = vmul.f32 %v142_v30, %v88_v31  ;;  %v86_v35 = vsel %vm85_vm3, %v140_v23, %v82_v33 }
  0x9a   :  { %v97_v39 = vmul.f32 %v86_v35, %v53_v29 }
  0x9b   :  { %v90_v34 = vmul.f32 0.5, %v89_v32 }
  0x9c   :  { %v100_v42 = vsel %vm99_vm7, %v97_v39, 0.0 }
  0x9d   :  { %v91_v36 = vsub.f32 1.5, %v90_v34 }
  0x9f   :  { %v92_v37 = vmul.f32 %v142_v30, %v91_v36 }
  0xa1   :  { %v96_v40 = vsel %vm95_vm6, %v142_v30, %v92_v37 }
  0xa2   :  { %v98_v41 = vmul.f32 %v96_v40, %v56_v38 }
  0xa4   :  { %v101_v43 = vsel %vm99_vm7, %v98_v41, 0.0 }
  0xa5   :  { %v102_v44 = vadd.f32 %v101_v43, %v100_v42 }
  0xa7   :  { %103 = vadd.xlane.f32.xlu0 %v102_v44 }
 0x11a   :  { %v104_v45 = vpop.xlane.xlu0 %103 }
 0x11b   :  { %v105_v46 = vrot.slane %v104_v45, 4 }
 0x11d   :  { %v106_v47 = vadd.f32 %v105_v46, %v104_v45 }
 0x11f   :  { %v107_v48 = vrot.slane %v106_v47, 2 }
 0x121   :  { %v108_v49 = vadd.f32 %v107_v48, %v106_v47 }
 0x123   :  { %v109_v50 = vrot.slane %v108_v49, 1 }
 0x125   :  { %v110_v51 = vadd.f32 %v109_v50, %v108_v49 }
 0x127   :  { %132 = vpush %v110_v51 }
 0x158   :  { %s133_s24 = spop %132 }
 0x159   :  { %v112_v52 = vstv %s133_s24 }
 0x15a   :  { %113 = vst [vmem:[#allocation7] sm:$0xff] %v112_v52 }
 0x15b   :  { %124 = dma.vmem_to_hbm [thread:$0]  %s120_s1, 128, %s122_s23, [#allocation4]  }
 0x15c   :  { %219 = dma.done.wait [#allocation4], 128  }
 0x15d   :  { %220 = vsyncadd [#allocation4], 4294967168 }
 0x15e   :  { %129 = vsyncpa [#allocation3], 1 }
 0x15f   :  { %130 = vsyncpa [#allocation6], 1 }
 0x160   :  { %131 = vsyncpa [#allocation4], 1 }

</bundles_post_ra>
